<compile_context>
chip_gen: v5e
topology: v5e:2x2
jax: 0.10.0
libtpu: 0.0.40
codegen_flags: <defaults>
</compile_context>

<pallas_src>
from typing import NamedTuple

import jax
import jax.numpy as jnp
from jax.experimental import pallas as pl
from jax.experimental.pallas import tpu as pltpu


def _round_up(x: int, m: int) -> int:
    return ((x + m - 1) // m) * m


def _tpu_resources():
    """Returns (vmem_limit_ceiling_bytes, num_tensorcores) for the local chip."""
    vmem_cap = None
    try:
        vmem_cap = int(pltpu.get_tpu_info().vmem_capacity_bytes)
    except Exception:
        vmem_cap = None
    if vmem_cap is None:
        vmem_cap = 64 * 2**20  # conservative default (v7x-sized VMEM)
    if vmem_cap <= 64 * 2**20:
        # v7x: 64 MiB/TC, 2 TCs/chip -> leave headroom for compiler scratch.
        ceiling = min(vmem_cap - 12 * 2**20, 52 * 2**20)
        num_tc = 2
    else:
        # v5e / v6e: 128 MiB VMEM, 1 TC/chip.
        ceiling = min(vmem_cap - 16 * 2**20, 112 * 2**20)
        num_tc = 1
    return max(ceiling, 32 * 2**20), num_tc


def mlp_kernel(x_ref, w1_ref, b1_ref, w2_ref, b2_ref, o_ref):
    # hidden = tanh(x @ W1 + b1)   (f32 accumulation, f32 epilogue)
    h = jnp.dot(x_ref[...], w1_ref[...], preferred_element_type=jnp.float32)
    h = jnp.tanh(h + b1_ref[...])
    # dropout (inference) -> identity
    # out = h @ W2 + b2
    y = jnp.dot(h.astype(w2_ref.dtype), w2_ref[...],
                preferred_element_type=jnp.float32)
    o_ref[...] = (y + b2_ref[...]).astype(o_ref.dtype)


class MLPParams(NamedTuple):
    w1: jax.Array   # (in_f, hid_p)   matmul dtype
    b1: jax.Array   # (1, hid_p)      f32
    w2: jax.Array   # (hid_p, out_p)  matmul dtype
    b2: jax.Array   # (1, out_p)      f32
    in_features: int
    hidden: int
    out_features: int


def prepare_mlp_params(w1, b1, w2, b2, *, matmul_dtype=None) -> MLPParams:
    """Pad/cast parameters ONCE (hoisted out of the per-call path).

    w1: (in_features, hidden)      (transposed nn.Linear weight)
    w2: (hidden, out_features)
    Only the lane (N) dims hidden/out are padded to multiples of 128 so stores
    stay lane-dense; the contraction dims are left untouched.
    """
    in_f, hidden = w1.shape
    out_f = w2.shape[1]
    mm_dtype = jnp.dtype(matmul_dtype) if matmul_dtype is not None else jnp.dtype(w1.dtype)
    hid_p = _round_up(hidden, 128)
    out_p = _round_up(out_f, 128)
    w1p = jnp.pad(w1, ((0, 0), (0, hid_p - hidden))).astype(mm_dtype)
    w2p = jnp.pad(w2, ((0, hid_p - hidden), (0, out_p - out_f))).astype(mm_dtype)
    b1p = jnp.pad(b1.reshape(1, -1).astype(jnp.float32),
                  ((0, 0), (0, hid_p - hidden)))
    b2p = jnp.pad(b2.reshape(1, -1).astype(jnp.float32),
                  ((0, 0), (0, out_p - out_f)))
    return MLPParams(w1p, b1p, w2p, b2p, in_f, hidden, out_f)


def two_layer_perceptron_apply(params: MLPParams, x, *, bm=512):
    """Fused two-layer MLP forward with pre-prepared (padded/cast) parameters."""
    B, in_f = x.shape
    assert in_f == params.in_features, (in_f, params.in_features)
    hid_p = params.w1.shape[1]
    out_p = params.w2.shape[1]
    out_f = params.out_features
    out_dtype = x.dtype
    mm_dtype = params.w1.dtype
    itm = jnp.dtype(mm_dtype).itemsize

    vmem_ceiling, num_tc = _tpu_resources()

    # Row alignment: sub-32-bit dtypes pack 2 (bf16) / 4 (8-bit) rows/sublane.
    row_align = {4: 8, 2: 16, 1: 32}.get(itm, 8)

    # Batch tile: as big as possible; only split to feed multiple TCs (v7x).
    bm = min(bm, _round_up(B, row_align))
    if num_tc > 1:
        bm = min(bm, _round_up(pl.cdiv(B, num_tc), row_align))
    bm = max(row_align, _round_up(bm, row_align))

    # Resident-weight VMEM footprint (single-buffered) + biases (sublane-padded).
    weight_bytes = (in_f * hid_p + hid_p * out_p) * itm + 8 * (hid_p + out_p) * 4

    def tile_bytes(bm_):
        return (2 * bm_ * in_f * itm                                  # x tile (2 bufs)
                + 2 * bm_ * out_p * jnp.dtype(out_dtype).itemsize     # out tile (2 bufs)
                + 3 * bm_ * hid_p * 4)                                # f32 intermediates

    if weight_bytes > 0.75 * vmem_ceiling:
        # TODO(synk): K/N-tiled accumulator-grid fallback for huge weights.
        raise NotImplementedError(
            "Resident weights (%d MiB) exceed the VMEM budget (%d MiB); the "
            "K/N-tiled fallback is not implemented yet."
            % (weight_bytes >> 20, vmem_ceiling >> 20))

    # Shrink bm if tiles + resident weights overshoot the budget.
    while bm > row_align and weight_bytes + tile_bytes(bm) > vmem_ceiling:
        bm = max(row_align, _round_up(bm // 2, row_align))

    Bp = _round_up(B, bm)
    grid = (Bp // bm,)

    vmem_limit = int(min(max(int(1.5 * (weight_bytes + tile_bytes(bm))),
                             32 * 2**20),
                         vmem_ceiling))

    # Per-call input prep: cast to matmul dtype; pad ONLY the batch axis if needed.
    xp = x.astype(mm_dtype)
    if Bp != B:
        xp = jnp.pad(xp, ((0, Bp - B), (0, 0)))

    def build(weight_buffers: int):
        # Constant-index weight/bias blocks: single-buffer (halves their VMEM).
        wmode = ({"pipeline_mode": pl.Buffered(weight_buffers)}
                 if weight_buffers != 2 else {})
        return pl.pallas_call(
            mlp_kernel,
            out_shape=jax.ShapeDtypeStruct((Bp, out_p), out_dtype),
            grid_spec=pltpu.PrefetchScalarGridSpec(
                num_scalar_prefetch=0,
                grid=grid,
                in_specs=[
                    pl.BlockSpec((bm, in_f), lambda i: (i, 0)),               # x tile
                    pl.BlockSpec((in_f, hid_p), lambda i: (0, 0), **wmode),   # W1 (resident)
                    pl.BlockSpec((1, hid_p), lambda i: (0, 0), **wmode),      # b1
                    pl.BlockSpec((hid_p, out_p), lambda i: (0, 0), **wmode),  # W2 (resident)
                    pl.BlockSpec((1, out_p), lambda i: (0, 0), **wmode),      # b2
                ],
                out_specs=pl.BlockSpec((bm, out_p), lambda i: (i, 0)),
            ),
            compiler_params=pltpu.CompilerParams(
                dimension_semantics=("parallel",),
                vmem_limit_bytes=vmem_limit,
            ),
        )

    try:
        out_padded = build(1)(xp, params.w1, params.b1, params.w2, params.b2)
    except Exception:
        # Conservative fallback: default double-buffered weight blocks.
        out_padded = build(2)(xp, params.w1, params.b1, params.w2, params.b2)

    if Bp != B or out_p != out_f:
        return out_padded[:B, :out_f]
    return out_padded


def two_layer_perceptron(x, w1, b1, w2, b2, *, bm=512, matmul_dtype=None):
    """One-shot convenience wrapper (pads/casts params internally).

    Prefer prepare_mlp_params() + two_layer_perceptron_apply() so the weight
    padding/casting is done once instead of every forward pass.
    """
    params = prepare_mlp_params(w1, b1, w2, b2, matmul_dtype=matmul_dtype)
    return two_layer_perceptron_apply(params, x, bm=bm)


if __name__ == "__main__":
    # Module config (small, consistent with the forward-pass semantics).
    in_features = 16
    hidden_dim = 32
    out_features = 8
    batch = 200   # deliberately NOT a multiple of 8/128 to exercise alignment

    key = jax.random.PRNGKey(0)
    kx, k1, kb1, k2, kb2 = jax.random.split(key, 5)

    # Deterministic parameter init (PyTorch-style uniform bounds); weights are
    # stored as (in, hidden) / (hidden, out) == transposed nn.Linear weights.
    bound1 = 1.0 / (in_features ** 0.5)
    bound2 = 1.0 / (hidden_dim ** 0.5)
    w1 = jax.random.uniform(k1, (in_features, hidden_dim), jnp.float32,
                            -bound1, bound1)
    b1 = jax.random.uniform(kb1, (hidden_dim,), jnp.float32, -bound1, bound1)
    w2 = jax.random.uniform(k2, (hidden_dim, out_features), jnp.float32,
                            -bound2, bound2)
    b2 = jax.random.uniform(kb2, (out_features,), jnp.float32, -bound2, bound2)

    x = jax.random.normal(kx, (batch, in_features), jnp.float32)

    # Pure-JAX reference (inference-mode forward: dropout is identity).
    ref = jnp.tanh(x @ w1 + b1) @ w2 + b2

    # f32 path: parameters prepared ONCE, reused per call (hoisted pads/casts).
    params_f32 = prepare_mlp_params(w1, b1, w2, b2)
    out = jax.block_until_ready(two_layer_perceptron_apply(params_f32, x))
    assert out.shape == (batch, out_features)
    assert jnp.allclose(out, ref, atol=1e-5, rtol=1e-5)

    # bf16 MXU path (valid on v5e/v6e/v7x; f32 accumulation + epilogue).
    params_bf16 = prepare_mlp_params(w1, b1, w2, b2, matmul_dtype=jnp.bfloat16)
    out_bf16 = jax.block_until_ready(two_layer_perceptron_apply(params_bf16, x))
    assert out_bf16.shape == (batch, out_features)
    assert jnp.allclose(out_bf16, ref, atol=5e-2, rtol=5e-2)

    # One-shot convenience wrapper still works.
    out2 = jax.block_until_ready(two_layer_perceptron(x, w1, b1, w2, b2))
    assert jnp.allclose(out2, ref, atol=1e-5, rtol=1e-5)

    print("KERNEL_OK")
</pallas_src>

<mosaic_0001>
module attributes {stable_mosaic.version = 11 : i64} {
  func.func @mlp_kernel(%arg0: i32, %arg1: memref<104x16xf32, #tpu.memory_space<vmem>>, %arg2: memref<16x128xf32, #tpu.memory_space<vmem>>, %arg3: memref<1x128xf32, #tpu.memory_space<vmem>>, %arg4: memref<128x128xf32, #tpu.memory_space<vmem>>, %arg5: memref<1x128xf32, #tpu.memory_space<vmem>>, %arg6: memref<104x128xf32, #tpu.memory_space<vmem>>) attributes {dimension_semantics = [#tpu.dimension_semantics<parallel>], iteration_bounds = array<i64: 2>, scalar_prefetch = 0 : i64, scratch_operands = 0 : i64, tpu.core_type = #tpu.core_type<tc>, window_params = [{transform_indices = @transform_0, window_bounds = array<i64: 104, 16>}, {pipeline_mode = #tpu.pipeline_mode<synchronous>, transform_indices = @transform_1, window_bounds = array<i64: 16, 128>}, {pipeline_mode = #tpu.pipeline_mode<synchronous>, transform_indices = @transform_2, window_bounds = array<i64: 1, 128>}, {pipeline_mode = #tpu.pipeline_mode<synchronous>, transform_indices = @transform_3, window_bounds = array<i64: 128, 128>}, {pipeline_mode = #tpu.pipeline_mode<synchronous>, transform_indices = @transform_4, window_bounds = array<i64: 1, 128>}, {transform_indices = @transform_5, window_bounds = array<i64: 104, 128>}]} {
    %c0 = arith.constant 0 : index
    %c0_0 = arith.constant 0 : index
    %0 = vector.load %arg1[%c0, %c0_0] : memref<104x16xf32, #tpu.memory_space<vmem>>, vector<104x16xf32>
    %c0_1 = arith.constant 0 : index
    %c0_2 = arith.constant 0 : index
    %1 = vector.load %arg2[%c0_1, %c0_2] : memref<16x128xf32, #tpu.memory_space<vmem>>, vector<16x128xf32>
    %cst = arith.constant dense<0.000000e+00> : vector<104x128xf32>
    %2 = tpu.matmul %0, %1, %cst {dimension_numbers = #tpu.dot_dimension_numbers<[1], [0], [0], [1], [0, 0, 1, 1], [], []>} : vector<104x16xf32>, vector<16x128xf32>, vector<104x128xf32> -> vector<104x128xf32>
    %c0_3 = arith.constant 0 : index
    %c0_4 = arith.constant 0 : index
    %3 = vector.load %arg3[%c0_3, %c0_4] : memref<1x128xf32, #tpu.memory_space<vmem>>, vector<1x128xf32>
    %4 = vector.broadcast %3 : vector<1x128xf32> to vector<104x128xf32>
    %5 = arith.addf %2, %4 : vector<104x128xf32>
    %6 = math.tanh %5 : vector<104x128xf32>
    %c0_5 = arith.constant 0 : index
    %c0_6 = arith.constant 0 : index
    %7 = vector.load %arg4[%c0_5, %c0_6] : memref<128x128xf32, #tpu.memory_space<vmem>>, vector<128x128xf32>
    %cst_7 = arith.constant dense<0.000000e+00> : vector<104x128xf32>
    %8 = tpu.matmul %6, %7, %cst_7 {dimension_numbers = #tpu.dot_dimension_numbers<[1], [0], [0], [1], [0, 0, 1, 1], [], []>} : vector<104x128xf32>, vector<128x128xf32>, vector<104x128xf32> -> vector<104x128xf32>
    %c0_8 = arith.constant 0 : index
    %c0_9 = arith.constant 0 : index
    %9 = vector.load %arg5[%c0_8, %c0_9] : memref<1x128xf32, #tpu.memory_space<vmem>>, vector<1x128xf32>
    %10 = vector.broadcast %9 : vector<1x128xf32> to vector<104x128xf32>
    %11 = arith.addf %8, %10 : vector<104x128xf32>
    %c0_10 = arith.constant 0 : index
    %c0_11 = arith.constant 0 : index
    %12 = vector.load %arg6[%c0_10, %c0_11] : memref<104x128xf32, #tpu.memory_space<vmem>>, vector<104x128xf32>
    tpu.vector_store %arg6[%c0_10, %c0_11], %11 {strides = array<i32>} : memref<104x128xf32, #tpu.memory_space<vmem>>, vector<104x128xf32>,
    return
  }
  func.func @transform_0(%arg0: i32) -> (i32, i32) {
    %c0_i32 = arith.constant 0 : i32
    %c0_i32_0 = arith.constant 0 : i32
    return %arg0, %c0_i32 : i32, i32
  }
  func.func @transform_1(%arg0: i32) -> (i32, i32) {
    %c0_i32 = arith.constant 0 : i32
    %c0_i32_0 = arith.constant 0 : i32
    %c0_i32_1 = arith.constant 0 : i32
    return %c0_i32, %c0_i32_0 : i32, i32
  }
  func.func @transform_2(%arg0: i32) -> (i32, i32) {
    %c0_i32 = arith.constant 0 : i32
    %c0_i32_0 = arith.constant 0 : i32
    %c0_i32_1 = arith.constant 0 : i32
    return %c0_i32, %c0_i32_0 : i32, i32
  }
  func.func @transform_3(%arg0: i32) -> (i32, i32) {
    %c0_i32 = arith.constant 0 : i32
    %c0_i32_0 = arith.constant 0 : i32
    %c0_i32_1 = arith.constant 0 : i32
    return %c0_i32, %c0_i32_0 : i32, i32
  }
  func.func @transform_4(%arg0: i32) -> (i32, i32) {
    %c0_i32 = arith.constant 0 : i32
    %c0_i32_0 = arith.constant 0 : i32
    %c0_i32_1 = arith.constant 0 : i32
    return %c0_i32, %c0_i32_0 : i32, i32
  }
  func.func @transform_5(%arg0: i32) -> (i32, i32) {
    %c0_i32 = arith.constant 0 : i32
    %c0_i32_0 = arith.constant 0 : i32
    return %arg0, %c0_i32 : i32, i32
  }
}

module attributes {stable_mosaic.version = 11 : i64} {
  func.func @mlp_kernel(%arg0: i32, %arg1: memref<104x16xf32, #tpu.memory_space<vmem>>, %arg2: memref<16x128xf32, #tpu.memory_space<vmem>>, %arg3: memref<1x128xf32, #tpu.memory_space<vmem>>, %arg4: memref<128x128xf32, #tpu.memory_space<vmem>>, %arg5: memref<1x128xf32, #tpu.memory_space<vmem>>, %arg6: memref<104x128xf32, #tpu.memory_space<vmem>>) attributes {dimension_semantics = [#tpu.dimension_semantics<parallel>], iteration_bounds = array<i64: 2>, scalar_prefetch = 0 : i64, scratch_operands = 0 : i64, tpu.core_type = #tpu.core_type<tc>, window_params = [{transform_indices = @transform_0, window_bounds = array<i64: 104, 16>}, {pipeline_mode = #tpu.pipeline_mode<synchronous>, transform_indices = @transform_1, window_bounds = array<i64: 16, 128>}, {pipeline_mode = #tpu.pipeline_mode<synchronous>, transform_indices = @transform_2, window_bounds = array<i64: 1, 128>}, {pipeline_mode = #tpu.pipeline_mode<synchronous>, transform_indices = @transform_3, window_bounds = array<i64: 128, 128>}, {pipeline_mode = #tpu.pipeline_mode<synchronous>, transform_indices = @transform_4, window_bounds = array<i64: 1, 128>}, {transform_indices = @transform_5, window_bounds = array<i64: 104, 128>}]} {
    %c0 = arith.constant 0 : index
    %c0_0 = arith.constant 0 : index
    %0 = vector.load %arg1[%c0, %c0_0] : memref<104x16xf32, #tpu.memory_space<vmem>>, vector<104x16xf32>
    %c0_1 = arith.constant 0 : index
    %c0_2 = arith.constant 0 : index
    %1 = vector.load %arg2[%c0_1, %c0_2] : memref<16x128xf32, #tpu.memory_space<vmem>>, vector<16x128xf32>
    %cst = arith.constant dense<0.000000e+00> : vector<104x128xf32>
    %2 = tpu.matmul %0, %1, %cst {dimension_numbers = #tpu.dot_dimension_numbers<[1], [0], [0], [1], [0, 0, 1, 1], [], []>} : vector<104x16xf32>, vector<16x128xf32>, vector<104x128xf32> -> vector<104x128xf32>
    %c0_3 = arith.constant 0 : index
    %c0_4 = arith.constant 0 : index
    %3 = vector.load %arg3[%c0_3, %c0_4] : memref<1x128xf32, #tpu.memory_space<vmem>>, vector<1x128xf32>
    %4 = vector.broadcast %3 : vector<1x128xf32> to vector<104x128xf32>
    %5 = arith.addf %2, %4 : vector<104x128xf32>
    %6 = math.tanh %5 : vector<104x128xf32>
    %c0_5 = arith.constant 0 : index
    %c0_6 = arith.constant 0 : index
    %7 = vector.load %arg4[%c0_5, %c0_6] : memref<128x128xf32, #tpu.memory_space<vmem>>, vector<128x128xf32>
    %cst_7 = arith.constant dense<0.000000e+00> : vector<104x128xf32>
    %8 = tpu.matmul %6, %7, %cst_7 {dimension_numbers = #tpu.dot_dimension_numbers<[1], [0], [0], [1], [0, 0, 1, 1], [], []>} : vector<104x128xf32>, vector<128x128xf32>, vector<104x128xf32> -> vector<104x128xf32>
    %c0_8 = arith.constant 0 : index
    %c0_9 = arith.constant 0 : index
    %9 = vector.load %arg5[%c0_8, %c0_9] : memref<1x128xf32, #tpu.memory_space<vmem>>, vector<1x128xf32>
    %10 = vector.broadcast %9 : vector<1x128xf32> to vector<104x128xf32>
    %11 = arith.addf %8, %10 : vector<104x128xf32>
    %c0_10 = arith.constant 0 : index
    %c0_11 = arith.constant 0 : index
    %12 = vector.load %arg6[%c0_10, %c0_11] : memref<104x128xf32, #tpu.memory_space<vmem>>, vector<104x128xf32>
    tpu.vector_store %arg6[%c0_10, %c0_11], %11 {strides = array<i32>} : memref<104x128xf32, #tpu.memory_space<vmem>>, vector<104x128xf32>,
    return
  }
  func.func @transform_0(%arg0: i32) -> (i32, i32) {
    %c0_i32 = arith.constant 0 : i32
    %c0_i32_0 = arith.constant 0 : i32
    return %arg0, %c0_i32 : i32, i32
  }
  func.func @transform_1(%arg0: i32) -> (i32, i32) {
    %c0_i32 = arith.constant 0 : i32
    %c0_i32_0 = arith.constant 0 : i32
    %c0_i32_1 = arith.constant 0 : i32
    return %c0_i32, %c0_i32_0 : i32, i32
  }
  func.func @transform_2(%arg0: i32) -> (i32, i32) {
    %c0_i32 = arith.constant 0 : i32
    %c0_i32_0 = arith.constant 0 : i32
    %c0_i32_1 = arith.constant 0 : i32
    return %c0_i32, %c0_i32_0 : i32, i32
  }
  func.func @transform_3(%arg0: i32) -> (i32, i32) {
    %c0_i32 = arith.constant 0 : i32
    %c0_i32_0 = arith.constant 0 : i32
    %c0_i32_1 = arith.constant 0 : i32
    return %c0_i32, %c0_i32_0 : i32, i32
  }
  func.func @transform_4(%arg0: i32) -> (i32, i32) {
    %c0_i32 = arith.constant 0 : i32
    %c0_i32_0 = arith.constant 0 : i32
    %c0_i32_1 = arith.constant 0 : i32
    return %c0_i32, %c0_i32_0 : i32, i32
  }
  func.func @transform_5(%arg0: i32) -> (i32, i32) {
    %c0_i32 = arith.constant 0 : i32
    %c0_i32_0 = arith.constant 0 : i32
    return %arg0, %c0_i32 : i32, i32
  }
}

</mosaic_0001>

<bundles_post_ra>
// kernel: tpu_custom_call.1
= control target key start
LH: loop header
LB: loop body
LE: loop exit
PB: predicated region body
PF: predicated region fallthrough
CT: control target
= control target key end

     0   :  { %10 = vsyncpa [#allocation3], 0  ;;  %s935_s0 = inlined_call_operand.vmem [shape: f32[208,16], index: 0, kind: input, shape index: {}]   ;;  %s936_s1 = inlined_call_operand.vmem [shape: f32[16,128], index: 1, kind: input, shape index: {}]   ;;  %s937_s2 = inlined_call_operand.vmem [shape: f32[1,128], index: 2, kind: input, shape index: {}]   ;;  %s938_s3 = inlined_call_operand.vmem [shape: f32[128,128], index: 3, kind: input, shape index: {}]   ;;  %s939_s4 = inlined_call_operand.vmem [shape: f32[1,128], index: 4, kind: input, shape index: {}]   ;;  %s940_s5 = inlined_call_operand.hbm [shape: f32[208,128], index: 5, kind: output, shape index: {}]  }
   0x1   :  { %12 = vsyncpa [#allocation3 + $0x1], 0  ;;  %s743_s18 = smov 0   ;;  %s745_s19 = smov 0  }
   0x2   :  { %s747_s20 = smov 0   ;;  %s749_s21 = smov 0  }
   0x3 LB: > { %s764_s22 = sadd.s32 4294967295, %s709_s21   ;;  %s521_s23 = sadd.s32 4294967294, %s709_s21   ;;  %s709_s21 = sphi %s749_s21, %s946_s21   ;;  %s705_s20 = sphi %s747_s20, %s945_s20   ;;  %s701_s19 = sphi %s745_s19, %s944_s19   ;;  %s697_s18 = sphi %s743_s18, %s943_s18  }
   0x4   : > { %s768_s24 = sadd.s32 1, %s709_s21   ;;  %s135_s25 = sadd.s32 1, %s705_s20 }
   0x5   : > { %s132_s26 = ssub.s32 %s709_s21, %s768_s24  ;;  %p145_p0 = scmp.ne.s32.totalorder %s705_s20, %s701_s19 }
   0x6   : > { %p133_p1 = scmp.eq.s32.totalorder %s132_s26, 0  ;;  %p146_p2 = scmp.eq.s32.totalorder %s764_s22, 1 }
   0x7   : > { %p151_p3 = scmp.ne.s32.totalorder %s701_s19, %s697_s18  ;;  %p152_p4 = scmp.eq.s32.totalorder %s521_s23, 1 }
   0x8   : > { %s779_s27 = scalar_select %p133_p1, %s705_s20, %s135_s25  }
   0x9   : > { %p781_p5 = por %p146_p2, %p145_p0  ;;  %p785_p6 = por %p152_p4, %p151_p3 }
   0xa   : > { %p524_p7 = scmp.ge.s32.totalorder %s709_s21, 1  ;;  %p191_p8 = scmp.lt.s32.totalorder %s709_s21, 3 }
   0xc   : > { %p192_p9 = pnand %p524_p7, %p191_p8 }
   0xd   : > { %s219_s9 = smul.u32 (!%p192_p9), 13, %s764_s22  ;;  %s216_s17 = sand.u32 (!%p192_p9), 1, %s701_s19  }
   0xe   : > { %195 = sbr.rel (%p192_p9) target bundleno = 368 (0x170), region = 40  ;;  %s444_s11 = scalar_lea.sflag (!%p192_p9), [#allocation3], %s216_s17 }
   0xf   : > { %p220_p10 = scmp.lt.s32.totalorder (!%p192_p9), %s219_s9, 25  ;;  %s577_s23 = smul.u32 (!%p192_p9), 104, %s216_s17 }
  0x10   : > { %s542_s6 = smul.u32 (!%p192_p9), 104, %s764_s22  ;;  %s667_s16 = scalar_lea.hbm (!%p192_p9), %s940_s5, 208 }
  0x11   : > { %s886_s30 = scalar_lea.vmem (!%p192_p9), [#allocation2], %s577_s23 }
  0x13   : > { %v240_v0 = vld [vmem:[%s936_s1 + $0x8] sm:$0xff]  ;;  %v239_v1 = vld [vmem:[%s936_s1] sm:$0xff]  ;;  %s948_s9 = smov (!%p220_p10, %s219_s9), 25  ;;  %vm245_vm0 = vcmask 130048   ;;  %v369_v11 = vld [vmem:[%s938_s3 + $0x78] sm:$0xff] }
  0x14   : > { %299 = vmatpush.msra.mxu0 %v240_v0  ;;  %543 = vmatpush.msra.mxu3 %v240_v0  ;;  %s525_s10 = sshll.u32 %s948_s9, 3  ;;  %v368_v12 = vld [vmem:[%s938_s3 + $0x70] sm:$0xff]  ;;  %v367_v13 = vld [vmem:[%s938_s3 + $0x68] sm:$0xff]  ;;  %v366_v14 = vld [vmem:[%s938_s3 + $0x60] sm:$0xff]  ;;  %s455_s9 = scalar_lea.hbm %s940_s5, %s542_s6 }
  0x15   : > { %s801_s13 = scalar_lea.vmem %s935_s0, %s525_s10  ;;  %374 = vmatpush.msra.mxu1 %v369_v11  ;;  %545 = vmatpush.msra.mxu2 %v369_v11  ;;  %v365_v16 = vld [vmem:[%s938_s3 + $0x58] sm:$0xff]  ;;  %v364_v17 = vld [vmem:[%s938_s3 + $0x50] sm:$0xff]  ;;  %v363_v18 = vld [vmem:[%s938_s3 + $0x48] sm:$0xff]  ;;  %s456_s10 = sshll.u32 %s886_s30, 4  ;;  %s457_s10 = int_to_ptr.vmem [resolvable:$true] %s456_s10 }
  0x16   : > { %300 = vmatpush.msra.mxu0 %v239_v1  ;;  %544 = vmatpush.msra.mxu3 %v239_v1  ;;  %v226_v2 = vld [vmem:[%s801_s13] sm:$0xff]  ;;  %v227_v3 = vld [vmem:[%s801_s13 + $0x8] sm:$0xff]  ;;  %v228_v5 = vld [vmem:[%s801_s13 + $0x10] sm:$0xff] }
  0x17   : > { %526 = vmatmul.msk.f32.vlgmr.msra.gmra.mxu0 %vm245_vm0, %v226_v2  ;;  %v235_v4 = vld [vmem:[%s801_s13 + $0x48] sm:$0xff]  ;;  %v236_v6 = vld [vmem:[%s801_s13 + $0x50] sm:$0xff]  ;;  %v229_v7 = vld [vmem:[%s801_s13 + $0x18] sm:$0xff]  ;;  %375 = vmatpush.msra.mxu1 %v368_v12 }
  0x18   : > { %535 = vmatmul.msk.f32.vlgmr.msra.gmra.mxu3 %vm245_vm0, %v235_v4  ;;  %v237_v8 = vld [vmem:[%s801_s13 + $0x58] sm:$0xff]  ;;  %v230_v9 = vld [vmem:[%s801_s13 + $0x20] sm:$0xff]  ;;  %547 = vmatpush.msra.mxu2 %v368_v12  ;;  %v231_v15 = vld [vmem:[%s801_s13 + $0x28] sm:$0xff] }
  0x19   : > { %v238_v10 = vld [vmem:[%s801_s13 + $0x60] sm:$0xff]  ;;  %546 = vmatpush.msrb.mxu3 %v369_v11  ;;  %376 = vmatpush.msra.mxu1 %v367_v13  ;;  %v232_v20 = vld [vmem:[%s801_s13 + $0x30] sm:$0xff]  ;;  %v361_v21 = vld [vmem:[%s938_s3 + $0x38] sm:$0xff] }
  0x1a   : > { %549 = vmatpush.msra.mxu2 %v367_v13  ;;  %v362_v19 = vld [vmem:[%s938_s3 + $0x40] sm:$0xff]  ;;  %v360_v22 = vld [vmem:[%s938_s3 + $0x30] sm:$0xff]  ;;  %v359_v23 = vld [vmem:[%s938_s3 + $0x28] sm:$0xff] }
  0x1b   : > { %548 = vmatpush.msrb.mxu3 %v368_v12  ;;  %377 = vmatpush.msra.mxu1 %v366_v14  ;;  %v233_v24 = vld [vmem:[%s801_s13 + $0x38] sm:$0xff]  ;;  %v234_v25 = vld [vmem:[%s801_s13 + $0x40] sm:$0xff]  ;;  %v356_v28 = vld [vmem:[%s938_s3 + $0x10] sm:$0xff]  ;;  %s458_s13 = sshll.u32 %s455_s9, 4  ;;  %s459_s13 = int_to_ptr.hbm [resolvable:$true] %s458_s13 }
  0x1c   : > { %551 = vmatpush.msra.mxu2 %v366_v14  ;;  %v358_v26 = vld [vmem:[%s938_s3 + $0x20] sm:$0xff]  ;;  %v357_v27 = vld [vmem:[%s938_s3 + $0x18] sm:$0xff]  ;;  %v355_v29 = vld [vmem:[%s938_s3 + $0x8] sm:$0xff]  ;;  %s661_s12 = sshra.s32 %s459_s13, 4  ;;  %s662_s12 = int_to_ptr.hbm [resolvable:$true] %s661_s12 }
  0x1d   : > { %550 = vmatpush.msrb.mxu3 %v367_v13  ;;  %378 = vmatpush.msra.mxu1 %v365_v16  ;;  %v354_v30 = vld [vmem:[%s938_s3] sm:$0xff]  ;;  %s663_s22 = scalar_lea.hbm %s662_s12, 104  ;;  %p668_p0 = scmp.lt.s32.totalorder %s662_s12, %s940_s5 }
  0x1e   : > { %553 = vmatpush.msra.mxu2 %v365_v16  ;;  %v619_v31 = vld [vmem:[%s937_s2] ss:$0 sm:$0xff]  ;;  %p664_p11 = scmp.ne.s32.totalorder %s662_s12, %s663_s22  ;;  %p669_p1 = scmp.lt.s32.totalorder %s667_s16, %s663_s22 }
  0x1f   : > { %527 = vmatmul.msk.f32.gmra.mxu0 %vm245_vm0, %v227_v3  ;;  %552 = vmatpush.msrb.mxu3 %v366_v14 }
  0x20   : > { %536 = vmatmul.msk.f32.gmra.mxu3 %vm245_vm0, %v236_v6  ;;  %379 = vmatpush.msra.mxu1 %v364_v17  ;;  %p665_p12 = pnand %p664_p11, %p781_p5  ;;  %p670_p2 = por %p669_p1, %p668_p0 }
  0x21   : > { %554 = vmatpush.msrb.mxu3 %v365_v16  ;;  %555 = vmatpush.msra.mxu2 %v364_v17 }
  0x22   : > { %380 = vmatpush.msra.mxu1 %v363_v18  ;;  %p666_p13 = pneg %p665_p12 }
  0x23   : > { %556 = vmatpush.msrb.mxu3 %v364_v17  ;;  %557 = vmatpush.msra.mxu2 %v363_v18 }
  0x24   : > { %381 = vmatpush.msra.mxu1 %v362_v19  ;;  %p671_p3 = pnand %p670_p2, %p666_p13 }
  0x25   : > { %558 = vmatpush.msrb.mxu3 %v363_v18  ;;  %559 = vmatpush.msra.mxu2 %v362_v19 }
  0x26   : > { %382 = vmatpush.msra.mxu1 %v361_v21 }
  0x27   : > { %528 = vmatmul.msk.f32.gmra.mxu0 %vm245_vm0, %v228_v5  ;;  %560 = vmatpush.msrb.mxu3 %v362_v19 }
  0x28   : > { %537 = vmatmul.msk.f32.gmra.mxu3 %vm245_vm0, %v237_v8  ;;  %561 = vmatpush.msra.mxu2 %v361_v21 }
  0x29   : > { %383 = vmatpush.msra.mxu1 %v360_v22  ;;  %562 = vmatpush.msrb.mxu3 %v361_v21 }
  0x2a   : > { %563 = vmatpush.msra.mxu2 %v360_v22 }
  0x2b   : > { %384 = vmatpush.msra.mxu1 %v359_v23  ;;  %564 = vmatpush.msrb.mxu3 %v360_v22 }
  0x2c   : > { %565 = vmatpush.msra.mxu2 %v359_v23 }
  0x2d   : > { %566 = vmatpush.msrb.mxu3 %v359_v23  ;;  %385 = vmatpush.msra.mxu1 %v358_v26 }
  0x2e   : > { %567 = vmatpush.msra.mxu2 %v358_v26 }
  0x2f   : > { %529 = vmatmul.msk.f32.gmra.mxu0 %vm245_vm0, %v229_v7  ;;  %568 = vmatpush.msrb.mxu3 %v358_v26  ;;  %v620_v7 = vld [vmem:[%s939_s4] ss:$0 sm:$0xff] }
  0x30   : > { %538 = vmatmul.msk.f32.gmra.mxu3 %vm245_vm0, %v238_v10  ;;  %386 = vmatpush.msra.mxu1 %v357_v27 }
  0x31   : > { %569 = vmatpush.msra.mxu2 %v357_v27  ;;  %570 = vmatpush.msrb.mxu3 %v357_v27 }
  0x32   : > { %387 = vmatpush.msra.mxu1 %v356_v28 }
  0x33   : > { %571 = vmatpush.msra.mxu2 %v356_v28  ;;  %572 = vmatpush.msrb.mxu3 %v356_v28 }
  0x34   : > { %388 = vmatpush.msra.mxu1 %v355_v29 }
  0x35   : > { %573 = vmatpush.msra.mxu2 %v355_v29  ;;  %574 = vmatpush.msrb.mxu3 %v355_v29 }
  0x36   : > { %389 = vmatpush.msra.mxu1 %v354_v30 }
  0x37   : > { %530 = vmatmul.msk.f32.gmra.mxu0 %vm245_vm0, %v230_v9  ;;  %575 = vmatpush.msra.mxu2 %v354_v30 }
  0x38   : > { %576 = vmatpush.msrb.mxu3 %v354_v30 }
  0x3f   : > { %531 = vmatmul.msk.f32.gmra.mxu0 %vm245_vm0, %v231_v15 }
  0x47   : > { %532 = vmatmul.msk.f32.gmra.mxu0 %vm245_vm0, %v232_v20 }
  0x4f   : > { %533 = vmatmul.msk.f32.gmra.mxu0 %vm245_vm0, %v233_v24 }
  0x57   : > { %534 = vmatmul.msk.f32.gmra.mxu0 %vm245_vm0, %v234_v25 }
  0x94   : > { %v302_v32 = vpop.f32.mrf.mxu0 }
  0x95   : > { %v303_v33 = vadd.f32 %v619_v31, %v302_v32 }
  0x97   : > { %621 = vtanh.f32 %v303_v33 }
  0x9b   : > { %v329_v38 = vpop.f32.mrf.mxu3 }
  0x9c   : > { %v305_v34 = vpop.f32.mrf.mxu0  ;;  %v330_v4 = vadd.f32 %v619_v31, %v329_v38 }
  0x9d   : > { %v622_v35 = vpop.eup %621  ;;  %v306_v36 = vadd.f32 %v619_v31, %v305_v34 }
  0x9e   : > { %390 = vmatmul.f32.vlgmr.msra.gmra.mxu1 %v622_v35 }
  0x9f   : > { %623 = vtanh.f32 %v306_v36 }
  0xa3   : > { %v332_v42 = vpop.f32.mrf.mxu3 }
  0xa4   : > { %v308_v37 = vpop.f32.mrf.mxu0  ;;  %v333_v45 = vadd.f32 %v619_v31, %v332_v42 }
  0xa5   : > { %v624_v39 = vpop.eup %623  ;;  %v309_v40 = vadd.f32 %v619_v31, %v308_v37 }
  0xa6   : > { %393 = vmatmul.f32.gmra.mxu1 %v624_v39 }
  0xa7   : > { %625 = vtanh.f32 %v309_v40 }
  0xab   : > { %v335_v47 = vpop.f32.mrf.mxu3 }
  0xac   : > { %v311_v41 = vpop.f32.mrf.mxu0  ;;  %v336_v50 = vadd.f32 %v619_v31, %v335_v47 }
  0xad   : > { %v626_v43 = vpop.eup %625  ;;  %v312_v44 = vadd.f32 %v619_v31, %v311_v41 }
  0xae   : > { %396 = vmatmul.f32.gmra.mxu1 %v626_v43 }
  0xaf   : > { %627 = vtanh.f32 %v312_v44 }
  0xb0   : > { %629 = vtanh.f32 %v333_v45 }
  0xb3   : > { %v338_v53 = vpop.f32.mrf.mxu3 }
  0xb4   : > { %v314_v46 = vpop.f32.mrf.mxu0  ;;  %v339_v56 = vadd.f32 %v619_v31, %v338_v53 }
  0xb5   : > { %v628_v48 = vpop.eup %627  ;;  %v315_v49 = vadd.f32 %v619_v31, %v314_v46 }
  0xb6   : > { %v630_v51 = vpop.eup %629  ;;  %399 = vmatmul.f32.gmra.mxu1 %v628_v48 }
  0xb7   : > { %631 = vtanh.f32 %v315_v49  ;;  %420 = vmatmul.f32.vlgmr.msrb.gmra.mxu3 %v630_v51 }
  0xb8   : > { %633 = vtanh.f32 %v336_v50 }
  0xbc   : > { %v317_v52 = vpop.f32.mrf.mxu0 }
  0xbd   : > { %v632_v54 = vpop.eup %631  ;;  %v318_v55 = vadd.f32 %v619_v31, %v317_v52 }
  0xbe   : > { %v634_v57 = vpop.eup %633  ;;  %402 = vmatmul.f32.gmra.mxu1 %v632_v54 }
  0xbf   : > { %635 = vtanh.f32 %v318_v55  ;;  %423 = vmatmul.f32.gmra.mxu3 %v634_v57 }
  0xc0   : > { %637 = vtanh.f32 %v339_v56 }
  0xc4   : > { %v320_v58 = vpop.f32.mrf.mxu0 }
  0xc5   : > { %v636_v59 = vpop.eup %635  ;;  %v321_v60 = vadd.f32 %v619_v31, %v320_v58 }
  0xc6   : > { %v638_v61 = vpop.eup %637  ;;  %405 = vmatmul.f32.vlgmr.msra.gmra.mxu2 %v636_v59 }
  0xc7   : > { %639 = vtanh.f32 %v321_v60  ;;  %426 = vmatmul.f32.gmra.mxu3 %v638_v61 }
  0xcc   : > { %v323_v62 = vpop.f32.mrf.mxu0 }
  0xcd   : > { %v640_v63 = vpop.eup %639  ;;  %v324_v0 = vadd.f32 %v619_v31, %v323_v62 }
  0xce   : > { %408 = vmatmul.f32.gmra.mxu2 %v640_v63 }
  0xcf   : > { %641 = vtanh.f32 %v324_v0 }
  0xd4   : > { %v326_v1 = vpop.f32.mrf.mxu0 }
  0xd5   : > { %v642_v2 = vpop.eup %641  ;;  %v327_v3 = vadd.f32 %v619_v31, %v326_v1 }
  0xd6   : > { %411 = vmatmul.f32.gmra.mxu2 %v642_v2 }
  0xd7   : > { %643 = vtanh.f32 %v327_v3 }
  0xd8   : > { %645 = vtanh.f32 %v330_v4 }
  0xdd   : > { %v644_v5 = vpop.eup %643 }
  0xde   : > { %414 = vmatmul.f32.gmra.mxu2 %v644_v5  ;;  %v646_v6 = vpop.eup %645 }
  0xe6   : > { %417 = vmatmul.f32.gmra.mxu2 %v646_v6 }
 0x11b   : > { %v391_v8 = vpop.f32.mrf.mxu1 }
 0x11c   : > { %v392_v9 = vadd.f32 %v620_v7, %v391_v8 }
 0x11e   : > { %430 = vst [vmem:[%s886_s30] sm:$0xff] %v392_v9 }
 0x123   : > { %v394_v10 = vpop.f32.mrf.mxu1 }
 0x124   : > { %v395_v11 = vadd.f32 %v620_v7, %v394_v10 }
 0x126   : > { %431 = vst [vmem:[%s886_s30 + $0x8] sm:$0xff] %v395_v11 }
 0x12b   : > { %v397_v12 = vpop.f32.mrf.mxu1 }
 0x12c   : > { %v398_v13 = vadd.f32 %v620_v7, %v397_v12 }
 0x12e   : > { %432 = vst [vmem:[%s886_s30 + $0x10] sm:$0xff] %v398_v13 }
 0x133   : > { %v400_v14 = vpop.f32.mrf.mxu1 }
 0x134   : > { %v401_v15 = vadd.f32 %v620_v7, %v400_v14 }
 0x136   : > { %433 = vst [vmem:[%s886_s30 + $0x18] sm:$0xff] %v401_v15 }
 0x13a   : > { %v421_v16 = vpop.f32.mrf.mxu3 }
 0x13b   : > { %v403_v17 = vpop.f32.mrf.mxu1  ;;  %v422_v18 = vadd.f32 %v620_v7, %v421_v16 }
 0x13c   : > { %v404_v19 = vadd.f32 %v620_v7, %v403_v17 }
 0x13d   : > { %440 = vst [vmem:[%s886_s30 + $0x50] sm:$0xff] %v422_v18 }
 0x13e   : > { %434 = vst [vmem:[%s886_s30 + $0x20] sm:$0xff] %v404_v19 }
 0x142   : > { %v424_v20 = vpop.f32.mrf.mxu3 }
 0x143   : > { %v425_v21 = vadd.f32 %v620_v7, %v424_v20 }
 0x145   : > { %441 = vst [vmem:[%s886_s30 + $0x58] sm:$0xff] %v425_v21 }
 0x149   : > { %v406_v22 = vpop.f32.mrf.mxu2 }
 0x14a   : > { %v407_v23 = vadd.f32 %v620_v7, %v406_v22  ;;  %v427_v24 = vpop.f32.mrf.mxu3 }
 0x14b   : > { %v428_v25 = vadd.f32 %v620_v7, %v427_v24 }
 0x14c   : > { %435 = vst [vmem:[%s886_s30 + $0x28] sm:$0xff] %v407_v23 }
 0x14d   : > { %442 = vst [vmem:[%s886_s30 + $0x60] sm:$0xff] %v428_v25 }
 0x151   : > { %v409_v26 = vpop.f32.mrf.mxu2 }
 0x152   : > { %v410_v27 = vadd.f32 %v620_v7, %v409_v26 }
 0x154   : > { %436 = vst [vmem:[%s886_s30 + $0x30] sm:$0xff] %v410_v27 }
 0x159   : > { %v412_v28 = vpop.f32.mrf.mxu2 }
 0x15a   : > { %v413_v29 = vadd.f32 %v620_v7, %v412_v28 }
 0x15c   : > { %437 = vst [vmem:[%s886_s30 + $0x38] sm:$0xff] %v413_v29 }
 0x161   : > { %v415_v30 = vpop.f32.mrf.mxu2 }
 0x162   : > { %v416_v31 = vadd.f32 %v620_v7, %v415_v30 }
 0x164   : > { %438 = vst [vmem:[%s886_s30 + $0x40] sm:$0xff] %v416_v31 }
 0x169   : > { %v418_v32 = vpop.f32.mrf.mxu2 }
 0x16a   : > { %v419_v33 = vadd.f32 %v620_v7, %v418_v32 }
 0x16c   : > { %439 = vst [vmem:[%s886_s30 + $0x48] sm:$0xff] %v419_v33 }
 0x16d   : > { %674 = shalt.err (!%p671_p3)
}
 0x16e   : > { %s711_s17 = smov 128   ;;  %s712_s26 = smov 8  }
 0x16f   : > { %578 = dma.vmem_to_hbm [thread:$0]  (%p781_p5), %s457_s10, 1664, %s459_s13, %s444_s11, %s711_s17, %s711_s17, %s712_s26  }
 0x170 PF: > { %p584_p4 = scmp.ge.s32.totalorder %s709_s21, 2  ;;  %s473_s30 = sand.u32 1, %s697_s18  }
 0x171   : > { %s474_s6 = scalar_lea.sflag [#allocation3], %s473_s30 }
 0x172   : > { %p581_p7 = pnand %p584_p4, %p785_p6 }
 0x174   : > { %p582_p8 = pneg %p581_p7 }
 0x176   : > { %692 = dma.done.wait (%p582_p8), %s474_s6, 1664  }
 0x177   : > { %694 = vsyncadd (%p582_p8), %s474_s6, 4294965632  ;;  %p15_p9 = scmp.ge.s32.totalorder %s768_s24, 4   ;;  %s943_s18 = smov %s701_s19 }
 0x178   : > { %s944_s19 = smov %s705_s20  ;;  %s945_s20 = smov %s779_s27 }
 0x179   : > { %s946_s21 = smov %s768_s24  ;;  %17 = sbr.rel (!%p15_p9) target bundleno = 3 (0x3), region = 75 }
 0x17e   :  { %480 = vsyncpa [#allocation3], 1 }
 0x17f   :  { %482 = vsyncpa [#allocation3 + $0x1], 1 }

// kernel: tpu_custom_call.1
= control target key start
LH: loop header
LB: loop body
LE: loop exit
PB: predicated region body
PF: predicated region fallthrough
CT: control target
= control target key end

     0   :  { %10 = vsyncpa [#allocation3], 0  ;;  %s935_s0 = inlined_call_operand.vmem [shape: f32[208,16], index: 0, kind: input, shape index: {}]   ;;  %s936_s1 = inlined_call_operand.vmem [shape: f32[16,128], index: 1, kind: input, shape index: {}]   ;;  %s937_s2 = inlined_call_operand.vmem [shape: f32[1,128], index: 2, kind: input, shape index: {}]   ;;  %s938_s3 = inlined_call_operand.vmem [shape: f32[128,128], index: 3, kind: input, shape index: {}]   ;;  %s939_s4 = inlined_call_operand.vmem [shape: f32[1,128], index: 4, kind: input, shape index: {}]   ;;  %s940_s5 = inlined_call_operand.hbm [shape: f32[208,128], index: 5, kind: output, shape index: {}]  }
   0x1   :  { %12 = vsyncpa [#allocation3 + $0x1], 0  ;;  %s743_s18 = smov 0   ;;  %s745_s19 = smov 0  }
   0x2   :  { %s747_s20 = smov 0   ;;  %s749_s21 = smov 0  }
   0x3 LB: > { %s764_s22 = sadd.s32 4294967295, %s709_s21   ;;  %s521_s23 = sadd.s32 4294967294, %s709_s21   ;;  %s709_s21 = sphi %s749_s21, %s946_s21   ;;  %s705_s20 = sphi %s747_s20, %s945_s20   ;;  %s701_s19 = sphi %s745_s19, %s944_s19   ;;  %s697_s18 = sphi %s743_s18, %s943_s18  }
   0x4   : > { %s768_s24 = sadd.s32 1, %s709_s21   ;;  %s135_s25 = sadd.s32 1, %s705_s20 }
   0x5   : > { %s132_s26 = ssub.s32 %s709_s21, %s768_s24  ;;  %p145_p0 = scmp.ne.s32.totalorder %s705_s20, %s701_s19 }
   0x6   : > { %p133_p1 = scmp.eq.s32.totalorder %s132_s26, 0  ;;  %p146_p2 = scmp.eq.s32.totalorder %s764_s22, 1 }
   0x7   : > { %p151_p3 = scmp.ne.s32.totalorder %s701_s19, %s697_s18  ;;  %p152_p4 = scmp.eq.s32.totalorder %s521_s23, 1 }
   0x8   : > { %s779_s27 = scalar_select %p133_p1, %s705_s20, %s135_s25  }
   0x9   : > { %p781_p5 = por %p146_p2, %p145_p0  ;;  %p785_p6 = por %p152_p4, %p151_p3 }
   0xa   : > { %p524_p7 = scmp.ge.s32.totalorder %s709_s21, 1  ;;  %p191_p8 = scmp.lt.s32.totalorder %s709_s21, 3 }
   0xc   : > { %p192_p9 = pnand %p524_p7, %p191_p8 }
   0xd   : > { %s219_s9 = smul.u32 (!%p192_p9), 13, %s764_s22  ;;  %s216_s17 = sand.u32 (!%p192_p9), 1, %s701_s19  }
   0xe   : > { %195 = sbr.rel (%p192_p9) target bundleno = 368 (0x170), region = 40  ;;  %s444_s11 = scalar_lea.sflag (!%p192_p9), [#allocation3], %s216_s17 }
   0xf   : > { %p220_p10 = scmp.lt.s32.totalorder (!%p192_p9), %s219_s9, 25  ;;  %s577_s23 = smul.u32 (!%p192_p9), 104, %s216_s17 }
  0x10   : > { %s542_s6 = smul.u32 (!%p192_p9), 104, %s764_s22  ;;  %s667_s16 = scalar_lea.hbm (!%p192_p9), %s940_s5, 208 }
  0x11   : > { %s886_s30 = scalar_lea.vmem (!%p192_p9), [#allocation2], %s577_s23 }
  0x13   : > { %v240_v0 = vld [vmem:[%s936_s1 + $0x8] sm:$0xff]  ;;  %v239_v1 = vld [vmem:[%s936_s1] sm:$0xff]  ;;  %s948_s9 = smov (!%p220_p10, %s219_s9), 25  ;;  %vm245_vm0 = vcmask 130048   ;;  %v369_v11 = vld [vmem:[%s938_s3 + $0x78] sm:$0xff] }
  0x14   : > { %299 = vmatpush.msra.mxu0 %v240_v0  ;;  %543 = vmatpush.msra.mxu3 %v240_v0  ;;  %s525_s10 = sshll.u32 %s948_s9, 3  ;;  %v368_v12 = vld [vmem:[%s938_s3 + $0x70] sm:$0xff]  ;;  %v367_v13 = vld [vmem:[%s938_s3 + $0x68] sm:$0xff]  ;;  %v366_v14 = vld [vmem:[%s938_s3 + $0x60] sm:$0xff]  ;;  %s455_s9 = scalar_lea.hbm %s940_s5, %s542_s6 }
  0x15   : > { %s801_s13 = scalar_lea.vmem %s935_s0, %s525_s10  ;;  %374 = vmatpush.msra.mxu1 %v369_v11  ;;  %545 = vmatpush.msra.mxu2 %v369_v11  ;;  %v365_v16 = vld [vmem:[%s938_s3 + $0x58] sm:$0xff]  ;;  %v364_v17 = vld [vmem:[%s938_s3 + $0x50] sm:$0xff]  ;;  %v363_v18 = vld [vmem:[%s938_s3 + $0x48] sm:$0xff]  ;;  %s456_s10 = sshll.u32 %s886_s30, 4  ;;  %s457_s10 = int_to_ptr.vmem [resolvable:$true] %s456_s10 }
  0x16   : > { %300 = vmatpush.msra.mxu0 %v239_v1  ;;  %544 = vmatpush.msra.mxu3 %v239_v1  ;;  %v226_v2 = vld [vmem:[%s801_s13] sm:$0xff]  ;;  %v227_v3 = vld [vmem:[%s801_s13 + $0x8] sm:$0xff]  ;;  %v228_v5 = vld [vmem:[%s801_s13 + $0x10] sm:$0xff] }
  0x17   : > { %526 = vmatmul.msk.f32.vlgmr.msra.gmra.mxu0 %vm245_vm0, %v226_v2  ;;  %v235_v4 = vld [vmem:[%s801_s13 + $0x48] sm:$0xff]  ;;  %v236_v6 = vld [vmem:[%s801_s13 + $0x50] sm:$0xff]  ;;  %v229_v7 = vld [vmem:[%s801_s13 + $0x18] sm:$0xff]  ;;  %375 = vmatpush.msra.mxu1 %v368_v12 }
  0x18   : > { %535 = vmatmul.msk.f32.vlgmr.msra.gmra.mxu3 %vm245_vm0, %v235_v4  ;;  %v237_v8 = vld [vmem:[%s801_s13 + $0x58] sm:$0xff]  ;;  %v230_v9 = vld [vmem:[%s801_s13 + $0x20] sm:$0xff]  ;;  %547 = vmatpush.msra.mxu2 %v368_v12  ;;  %v231_v15 = vld [vmem:[%s801_s13 + $0x28] sm:$0xff] }
  0x19   : > { %v238_v10 = vld [vmem:[%s801_s13 + $0x60] sm:$0xff]  ;;  %546 = vmatpush.msrb.mxu3 %v369_v11  ;;  %376 = vmatpush.msra.mxu1 %v367_v13  ;;  %v232_v20 = vld [vmem:[%s801_s13 + $0x30] sm:$0xff]  ;;  %v361_v21 = vld [vmem:[%s938_s3 + $0x38] sm:$0xff] }
  0x1a   : > { %549 = vmatpush.msra.mxu2 %v367_v13  ;;  %v362_v19 = vld [vmem:[%s938_s3 + $0x40] sm:$0xff]  ;;  %v360_v22 = vld [vmem:[%s938_s3 + $0x30] sm:$0xff]  ;;  %v359_v23 = vld [vmem:[%s938_s3 + $0x28] sm:$0xff] }
  0x1b   : > { %548 = vmatpush.msrb.mxu3 %v368_v12  ;;  %377 = vmatpush.msra.mxu1 %v366_v14  ;;  %v233_v24 = vld [vmem:[%s801_s13 + $0x38] sm:$0xff]  ;;  %v234_v25 = vld [vmem:[%s801_s13 + $0x40] sm:$0xff]  ;;  %v356_v28 = vld [vmem:[%s938_s3 + $0x10] sm:$0xff]  ;;  %s458_s13 = sshll.u32 %s455_s9, 4  ;;  %s459_s13 = int_to_ptr.hbm [resolvable:$true] %s458_s13 }
  0x1c   : > { %551 = vmatpush.msra.mxu2 %v366_v14  ;;  %v358_v26 = vld [vmem:[%s938_s3 + $0x20] sm:$0xff]  ;;  %v357_v27 = vld [vmem:[%s938_s3 + $0x18] sm:$0xff]  ;;  %v355_v29 = vld [vmem:[%s938_s3 + $0x8] sm:$0xff]  ;;  %s661_s12 = sshra.s32 %s459_s13, 4  ;;  %s662_s12 = int_to_ptr.hbm [resolvable:$true] %s661_s12 }
  0x1d   : > { %550 = vmatpush.msrb.mxu3 %v367_v13  ;;  %378 = vmatpush.msra.mxu1 %v365_v16  ;;  %v354_v30 = vld [vmem:[%s938_s3] sm:$0xff]  ;;  %s663_s22 = scalar_lea.hbm %s662_s12, 104  ;;  %p668_p0 = scmp.lt.s32.totalorder %s662_s12, %s940_s5 }
  0x1e   : > { %553 = vmatpush.msra.mxu2 %v365_v16  ;;  %v619_v31 = vld [vmem:[%s937_s2] ss:$0 sm:$0xff]  ;;  %p664_p11 = scmp.ne.s32.totalorder %s662_s12, %s663_s22  ;;  %p669_p1 = scmp.lt.s32.totalorder %s667_s16, %s663_s22 }
  0x1f   : > { %527 = vmatmul.msk.f32.gmra.mxu0 %vm245_vm0, %v227_v3  ;;  %552 = vmatpush.msrb.mxu3 %v366_v14 }
  0x20   : > { %536 = vmatmul.msk.f32.gmra.mxu3 %vm245_vm0, %v236_v6  ;;  %379 = vmatpush.msra.mxu1 %v364_v17  ;;  %p665_p12 = pnand %p664_p11, %p781_p5  ;;  %p670_p2 = por %p669_p1, %p668_p0 }
  0x21   : > { %554 = vmatpush.msrb.mxu3 %v365_v16  ;;  %555 = vmatpush.msra.mxu2 %v364_v17 }
  0x22   : > { %380 = vmatpush.msra.mxu1 %v363_v18  ;;  %p666_p13 = pneg %p665_p12 }
  0x23   : > { %556 = vmatpush.msrb.mxu3 %v364_v17  ;;  %557 = vmatpush.msra.mxu2 %v363_v18 }
  0x24   : > { %381 = vmatpush.msra.mxu1 %v362_v19  ;;  %p671_p3 = pnand %p670_p2, %p666_p13 }
  0x25   : > { %558 = vmatpush.msrb.mxu3 %v363_v18  ;;  %559 = vmatpush.msra.mxu2 %v362_v19 }
  0x26   : > { %382 = vmatpush.msra.mxu1 %v361_v21 }
  0x27   : > { %528 = vmatmul.msk.f32.gmra.mxu0 %vm245_vm0, %v228_v5  ;;  %560 = vmatpush.msrb.mxu3 %v362_v19 }
  0x28   : > { %537 = vmatmul.msk.f32.gmra.mxu3 %vm245_vm0, %v237_v8  ;;  %561 = vmatpush.msra.mxu2 %v361_v21 }
  0x29   : > { %383 = vmatpush.msra.mxu1 %v360_v22  ;;  %562 = vmatpush.msrb.mxu3 %v361_v21 }
  0x2a   : > { %563 = vmatpush.msra.mxu2 %v360_v22 }
  0x2b   : > { %384 = vmatpush.msra.mxu1 %v359_v23  ;;  %564 = vmatpush.msrb.mxu3 %v360_v22 }
  0x2c   : > { %565 = vmatpush.msra.mxu2 %v359_v23 }
  0x2d   : > { %566 = vmatpush.msrb.mxu3 %v359_v23  ;;  %385 = vmatpush.msra.mxu1 %v358_v26 }
  0x2e   : > { %567 = vmatpush.msra.mxu2 %v358_v26 }
  0x2f   : > { %529 = vmatmul.msk.f32.gmra.mxu0 %vm245_vm0, %v229_v7  ;;  %568 = vmatpush.msrb.mxu3 %v358_v26  ;;  %v620_v7 = vld [vmem:[%s939_s4] ss:$0 sm:$0xff] }
  0x30   : > { %538 = vmatmul.msk.f32.gmra.mxu3 %vm245_vm0, %v238_v10  ;;  %386 = vmatpush.msra.mxu1 %v357_v27 }
  0x31   : > { %569 = vmatpush.msra.mxu2 %v357_v27  ;;  %570 = vmatpush.msrb.mxu3 %v357_v27 }
  0x32   : > { %387 = vmatpush.msra.mxu1 %v356_v28 }
  0x33   : > { %571 = vmatpush.msra.mxu2 %v356_v28  ;;  %572 = vmatpush.msrb.mxu3 %v356_v28 }
  0x34   : > { %388 = vmatpush.msra.mxu1 %v355_v29 }
  0x35   : > { %573 = vmatpush.msra.mxu2 %v355_v29  ;;  %574 = vmatpush.msrb.mxu3 %v355_v29 }
  0x36   : > { %389 = vmatpush.msra.mxu1 %v354_v30 }
  0x37   : > { %530 = vmatmul.msk.f32.gmra.mxu0 %vm245_vm0, %v230_v9  ;;  %575 = vmatpush.msra.mxu2 %v354_v30 }
  0x38   : > { %576 = vmatpush.msrb.mxu3 %v354_v30 }
  0x3f   : > { %531 = vmatmul.msk.f32.gmra.mxu0 %vm245_vm0, %v231_v15 }
  0x47   : > { %532 = vmatmul.msk.f32.gmra.mxu0 %vm245_vm0, %v232_v20 }
  0x4f   : > { %533 = vmatmul.msk.f32.gmra.mxu0 %vm245_vm0, %v233_v24 }
  0x57   : > { %534 = vmatmul.msk.f32.gmra.mxu0 %vm245_vm0, %v234_v25 }
  0x94   : > { %v302_v32 = vpop.f32.mrf.mxu0 }
  0x95   : > { %v303_v33 = vadd.f32 %v619_v31, %v302_v32 }
  0x97   : > { %621 = vtanh.f32 %v303_v33 }
  0x9b   : > { %v329_v38 = vpop.f32.mrf.mxu3 }
  0x9c   : > { %v305_v34 = vpop.f32.mrf.mxu0  ;;  %v330_v4 = vadd.f32 %v619_v31, %v329_v38 }
  0x9d   : > { %v622_v35 = vpop.eup %621  ;;  %v306_v36 = vadd.f32 %v619_v31, %v305_v34 }
  0x9e   : > { %390 = vmatmul.f32.vlgmr.msra.gmra.mxu1 %v622_v35 }
  0x9f   : > { %623 = vtanh.f32 %v306_v36 }
  0xa3   : > { %v332_v42 = vpop.f32.mrf.mxu3 }
  0xa4   : > { %v308_v37 = vpop.f32.mrf.mxu0  ;;  %v333_v45 = vadd.f32 %v619_v31, %v332_v42 }
  0xa5   : > { %v624_v39 = vpop.eup %623  ;;  %v309_v40 = vadd.f32 %v619_v31, %v308_v37 }
  0xa6   : > { %393 = vmatmul.f32.gmra.mxu1 %v624_v39 }
  0xa7   : > { %625 = vtanh.f32 %v309_v40 }
  0xab   : > { %v335_v47 = vpop.f32.mrf.mxu3 }
  0xac   : > { %v311_v41 = vpop.f32.mrf.mxu0  ;;  %v336_v50 = vadd.f32 %v619_v31, %v335_v47 }
  0xad   : > { %v626_v43 = vpop.eup %625  ;;  %v312_v44 = vadd.f32 %v619_v31, %v311_v41 }
  0xae   : > { %396 = vmatmul.f32.gmra.mxu1 %v626_v43 }
  0xaf   : > { %627 = vtanh.f32 %v312_v44 }
  0xb0   : > { %629 = vtanh.f32 %v333_v45 }
  0xb3   : > { %v338_v53 = vpop.f32.mrf.mxu3 }
  0xb4   : > { %v314_v46 = vpop.f32.mrf.mxu0  ;;  %v339_v56 = vadd.f32 %v619_v31, %v338_v53 }
  0xb5   : > { %v628_v48 = vpop.eup %627  ;;  %v315_v49 = vadd.f32 %v619_v31, %v314_v46 }
  0xb6   : > { %v630_v51 = vpop.eup %629  ;;  %399 = vmatmul.f32.gmra.mxu1 %v628_v48 }
  0xb7   : > { %631 = vtanh.f32 %v315_v49  ;;  %420 = vmatmul.f32.vlgmr.msrb.gmra.mxu3 %v630_v51 }
  0xb8   : > { %633 = vtanh.f32 %v336_v50 }
  0xbc   : > { %v317_v52 = vpop.f32.mrf.mxu0 }
  0xbd   : > { %v632_v54 = vpop.eup %631  ;;  %v318_v55 = vadd.f32 %v619_v31, %v317_v52 }
  0xbe   : > { %v634_v57 = vpop.eup %633  ;;  %402 = vmatmul.f32.gmra.mxu1 %v632_v54 }
  0xbf   : > { %635 = vtanh.f32 %v318_v55  ;;  %423 = vmatmul.f32.gmra.mxu3 %v634_v57 }
  0xc0   : > { %637 = vtanh.f32 %v339_v56 }
  0xc4   : > { %v320_v58 = vpop.f32.mrf.mxu0 }
  0xc5   : > { %v636_v59 = vpop.eup %635  ;;  %v321_v60 = vadd.f32 %v619_v31, %v320_v58 }
  0xc6   : > { %v638_v61 = vpop.eup %637  ;;  %405 = vmatmul.f32.vlgmr.msra.gmra.mxu2 %v636_v59 }
  0xc7   : > { %639 = vtanh.f32 %v321_v60  ;;  %426 = vmatmul.f32.gmra.mxu3 %v638_v61 }
  0xcc   : > { %v323_v62 = vpop.f32.mrf.mxu0 }
  0xcd   : > { %v640_v63 = vpop.eup %639  ;;  %v324_v0 = vadd.f32 %v619_v31, %v323_v62 }
  0xce   : > { %408 = vmatmul.f32.gmra.mxu2 %v640_v63 }
  0xcf   : > { %641 = vtanh.f32 %v324_v0 }
  0xd4   : > { %v326_v1 = vpop.f32.mrf.mxu0 }
  0xd5   : > { %v642_v2 = vpop.eup %641  ;;  %v327_v3 = vadd.f32 %v619_v31, %v326_v1 }
  0xd6   : > { %411 = vmatmul.f32.gmra.mxu2 %v642_v2 }
  0xd7   : > { %643 = vtanh.f32 %v327_v3 }
  0xd8   : > { %645 = vtanh.f32 %v330_v4 }
  0xdd   : > { %v644_v5 = vpop.eup %643 }
  0xde   : > { %414 = vmatmul.f32.gmra.mxu2 %v644_v5  ;;  %v646_v6 = vpop.eup %645 }
  0xe6   : > { %417 = vmatmul.f32.gmra.mxu2 %v646_v6 }
 0x11b   : > { %v391_v8 = vpop.f32.mrf.mxu1 }
 0x11c   : > { %v392_v9 = vadd.f32 %v620_v7, %v391_v8 }
 0x11e   : > { %430 = vst [vmem:[%s886_s30] sm:$0xff] %v392_v9 }
 0x123   : > { %v394_v10 = vpop.f32.mrf.mxu1 }
 0x124   : > { %v395_v11 = vadd.f32 %v620_v7, %v394_v10 }
 0x126   : > { %431 = vst [vmem:[%s886_s30 + $0x8] sm:$0xff] %v395_v11 }
 0x12b   : > { %v397_v12 = vpop.f32.mrf.mxu1 }
 0x12c   : > { %v398_v13 = vadd.f32 %v620_v7, %v397_v12 }
 0x12e   : > { %432 = vst [vmem:[%s886_s30 + $0x10] sm:$0xff] %v398_v13 }
 0x133   : > { %v400_v14 = vpop.f32.mrf.mxu1 }
 0x134   : > { %v401_v15 = vadd.f32 %v620_v7, %v400_v14 }
 0x136   : > { %433 = vst [vmem:[%s886_s30 + $0x18] sm:$0xff] %v401_v15 }
 0x13a   : > { %v421_v16 = vpop.f32.mrf.mxu3 }
 0x13b   : > { %v403_v17 = vpop.f32.mrf.mxu1  ;;  %v422_v18 = vadd.f32 %v620_v7, %v421_v16 }
 0x13c   : > { %v404_v19 = vadd.f32 %v620_v7, %v403_v17 }
 0x13d   : > { %440 = vst [vmem:[%s886_s30 + $0x50] sm:$0xff] %v422_v18 }
 0x13e   : > { %434 = vst [vmem:[%s886_s30 + $0x20] sm:$0xff] %v404_v19 }
 0x142   : > { %v424_v20 = vpop.f32.mrf.mxu3 }
 0x143   : > { %v425_v21 = vadd.f32 %v620_v7, %v424_v20 }
 0x145   : > { %441 = vst [vmem:[%s886_s30 + $0x58] sm:$0xff] %v425_v21 }
 0x149   : > { %v406_v22 = vpop.f32.mrf.mxu2 }
 0x14a   : > { %v407_v23 = vadd.f32 %v620_v7, %v406_v22  ;;  %v427_v24 = vpop.f32.mrf.mxu3 }
 0x14b   : > { %v428_v25 = vadd.f32 %v620_v7, %v427_v24 }
 0x14c   : > { %435 = vst [vmem:[%s886_s30 + $0x28] sm:$0xff] %v407_v23 }
 0x14d   : > { %442 = vst [vmem:[%s886_s30 + $0x60] sm:$0xff] %v428_v25 }
 0x151   : > { %v409_v26 = vpop.f32.mrf.mxu2 }
 0x152   : > { %v410_v27 = vadd.f32 %v620_v7, %v409_v26 }
 0x154   : > { %436 = vst [vmem:[%s886_s30 + $0x30] sm:$0xff] %v410_v27 }
 0x159   : > { %v412_v28 = vpop.f32.mrf.mxu2 }
 0x15a   : > { %v413_v29 = vadd.f32 %v620_v7, %v412_v28 }
 0x15c   : > { %437 = vst [vmem:[%s886_s30 + $0x38] sm:$0xff] %v413_v29 }
 0x161   : > { %v415_v30 = vpop.f32.mrf.mxu2 }
 0x162   : > { %v416_v31 = vadd.f32 %v620_v7, %v415_v30 }
 0x164   : > { %438 = vst [vmem:[%s886_s30 + $0x40] sm:$0xff] %v416_v31 }
 0x169   : > { %v418_v32 = vpop.f32.mrf.mxu2 }
 0x16a   : > { %v419_v33 = vadd.f32 %v620_v7, %v418_v32 }
 0x16c   : > { %439 = vst [vmem:[%s886_s30 + $0x48] sm:$0xff] %v419_v33 }
 0x16d   : > { %674 = shalt.err (!%p671_p3)
}
 0x16e   : > { %s711_s17 = smov 128   ;;  %s712_s26 = smov 8  }
 0x16f   : > { %578 = dma.vmem_to_hbm [thread:$0]  (%p781_p5), %s457_s10, 1664, %s459_s13, %s444_s11, %s711_s17, %s711_s17, %s712_s26  }
 0x170 PF: > { %p584_p4 = scmp.ge.s32.totalorder %s709_s21, 2  ;;  %s473_s30 = sand.u32 1, %s697_s18  }
 0x171   : > { %s474_s6 = scalar_lea.sflag [#allocation3], %s473_s30 }
 0x172   : > { %p581_p7 = pnand %p584_p4, %p785_p6 }
 0x174   : > { %p582_p8 = pneg %p581_p7 }
 0x176   : > { %692 = dma.done.wait (%p582_p8), %s474_s6, 1664  }
 0x177   : > { %694 = vsyncadd (%p582_p8), %s474_s6, 4294965632  ;;  %p15_p9 = scmp.ge.s32.totalorder %s768_s24, 4   ;;  %s943_s18 = smov %s701_s19 }
 0x178   : > { %s944_s19 = smov %s705_s20  ;;  %s945_s20 = smov %s779_s27 }
 0x179   : > { %s946_s21 = smov %s768_s24  ;;  %17 = sbr.rel (!%p15_p9) target bundleno = 3 (0x3), region = 75 }
 0x17e   :  { %480 = vsyncpa [#allocation3], 1 }
 0x17f   :  { %482 = vsyncpa [#allocation3 + $0x1], 1 }

</bundles_post_ra>
